<compile_context>
chip_gen: v5e
topology: v5e:2x2
jax: 0.10.0
libtpu: 0.0.40
codegen_flags: <defaults>
</compile_context>

<pallas_src>
import functools

import jax
import jax.numpy as jnp
from jax.experimental import pallas as pl
from jax.experimental.pallas import tpu as pltpu


def _conv_pre_wav_kernel(pool_size, L, x_ref, w1_ref, w2_ref,
                         g1_ref, b1_ref, g2_ref, b2_ref, o_ref, m_scr):
    """Fused conv1+bn1+relu, conv2(dil=2)+bn2+relu, maxpool on one VMEM tile.

    x_ref : (B*L, 3*Cin)   im2col'd input (taps K-packed), channels-last
    w1_ref: (3*Cin, Cout)  conv1 weights, K-packed
    w2_ref: (Cout, 3*Cout) conv2 weights, N-packed (tap k in lanes [k*Cout,(k+1)*Cout))
    g*/b* : (1, Cout)      BatchNorm affine parameters
    o_ref : (B*Lout, Cout)
    m_scr : (B*L, Cout)    VMEM staging for the strided window-start gather
    """
    BL = x_ref.shape[0]
    Cout = o_ref.shape[1]
    n_win = o_ref.shape[0]                 # B * (L // pool_size)
    eps = 1e-5
    n = float(BL)                          # BN normalizes over batch * length

    # per-row position inside its example (conv2 boundary masks only)
    r = jax.lax.broadcasted_iota(jnp.int32, (BL, 1), 0)
    if (L & (L - 1)) == 0:
        pos = r & (L - 1)                  # power-of-two fast path (no vector div)
    else:
        pos = jax.lax.rem(r, jnp.int32(L))

    # ---- conv1: k=3, stride=1, pad=1 -> single K-packed MXU matmul ---------
    y1 = jnp.dot(x_ref[...], w1_ref[...], preferred_element_type=jnp.float32)

    # ---- bn1 (training-mode batch stats, one pass) + ReLU -------------------
    s1 = jnp.sum(y1, axis=0, keepdims=True)
    q1 = jnp.sum(y1 * y1, axis=0, keepdims=True)
    mean1 = s1 / n
    var1 = q1 / n - mean1 * mean1                      # biased variance
    scale1 = g1_ref[...] * jax.lax.rsqrt(var1 + eps)
    shift1 = b1_ref[...] - mean1 * scale1
    h = jnp.maximum(y1 * scale1 + shift1, 0.0)         # (B*L, Cout), f32

    # ---- conv2: k=3, dilation=2, pad=2 -> single N-packed MXU matmul --------
    z = jnp.dot(h.astype(w2_ref.dtype), w2_ref[...],
                preferred_element_type=jnp.float32)     # (B*L, 3*Cout)
    z0 = z[:, 0:Cout]              # tap 0 (applies to h[l-2])
    z1 = z[:, Cout:2 * Cout]       # tap 1 (applies to h[l])
    z2 = z[:, 2 * Cout:3 * Cout]   # tap 2 (applies to h[l+2])
    y2 = (jnp.where(pos >= 2, pltpu.roll(z0, 2, axis=0), 0.0)
          + z1
          + jnp.where(pos <= L - 3, pltpu.roll(z2, BL - 2, axis=0), 0.0))

    # ---- bn2 + ReLU ----------------------------------------------------------
    s2 = jnp.sum(y2, axis=0, keepdims=True)
    q2 = jnp.sum(y2 * y2, axis=0, keepdims=True)
    mean2 = s2 / n
    var2 = q2 / n - mean2 * mean2
    scale2 = g2_ref[...] * jax.lax.rsqrt(var2 + eps)
    shift2 = b2_ref[...] - mean2 * scale2
    h2 = jnp.maximum(y2 * scale2 + shift2, 0.0)         # (B*L, Cout)

    # ---- max_pool1d(kernel=stride=pool_size), floor mode ---------------------
    # Reduce in registers first (XLU rolls + VPU maxima), store once, then one
    # sublane-strided load of the window-start rows.  Window rows never straddle
    # examples because pool_size | L.
    m = h2
    for p in range(1, pool_size):
        m = jnp.maximum(m, pltpu.roll(h2, BL - p, axis=0))
    m_scr[...] = m
    o_ref[...] = m_scr[pl.ds(0, n_win, stride=pool_size), :].astype(o_ref.dtype)


def conv_pre_wav_block(x_ncl, w1, w2, g1, b1, g2, b2, pool_size=4,
                       use_bf16_matmul=False):
    """x_ncl: (B, Cin, L) PyTorch NCL layout.  Returns (B, Cout, L // pool_size)."""
    B, Cin, L = x_ncl.shape
    Cout = w1.shape[0]
    Lout = L // pool_size
    BL = B * L
    # In-kernel strided pooling assumes windows never straddle examples, which
    # holds whenever pool_size divides L (always true in PANN usage).
    assert L % pool_size == 0, "pool_size must divide L"

    mm_dtype = jnp.bfloat16 if use_bf16_matmul else jnp.float32

    # TODO(synk): when chaining pre-wav blocks keep activations channels-last
    # end-to-end; the NCL<->NLC transposes here only exist to match the PyTorch
    # interface at the block boundary.
    x_nlc = jnp.transpose(x_ncl, (0, 2, 1)).astype(jnp.float32)     # (B, L, Cin)
    # im2col for conv1 (k=3, pad=1): taps packed along K -> one dense MXU matmul.
    xp = jnp.pad(x_nlc, ((0, 0), (1, 1), (0, 0)))
    x_i2c = jnp.concatenate([xp[:, 0:L], xp[:, 1:L + 1], xp[:, 2:L + 2]],
                            axis=-1).reshape(BL, 3 * Cin).astype(mm_dtype)

    # conv1 weights K-packed:  w1p[k*Cin + i, o]  = w1[o, i, k]
    w1p = jnp.transpose(w1, (2, 1, 0)).reshape(3 * Cin, Cout).astype(mm_dtype)
    # conv2 weights N-packed:  w2p[i, k*Cout + o] = w2[o, i, k]
    w2p = jnp.transpose(w2, (1, 2, 0)).reshape(Cout, 3 * Cout).astype(mm_dtype)

    flops = 2 * BL * Cout * (3 * Cin + 3 * Cout) + 14 * BL * Cout
    bytes_accessed = (x_i2c.dtype.itemsize * x_i2c.size
                      + w1p.dtype.itemsize * w1p.size
                      + w2p.dtype.itemsize * w2p.size
                      + 4 * 4 * Cout
                      + 4 * 2 * BL * Cout           # pool staging store + reload
                      + 4 * B * Lout * Cout)

    kernel = functools.partial(_conv_pre_wav_kernel, pool_size, L)
    out2d = pl.pallas_call(
        kernel,
        out_shape=jax.ShapeDtypeStruct((B * Lout, Cout), jnp.float32),
        in_specs=[pl.BlockSpec(memory_space=pltpu.MemorySpace.VMEM)] * 7,
        out_specs=pl.BlockSpec(memory_space=pltpu.MemorySpace.VMEM),
        scratch_shapes=[pltpu.VMEM((BL, Cout), jnp.float32)],   # pool staging
        compiler_params=pltpu.CompilerParams(vmem_limit_bytes=32 * 1024 * 1024),
        cost_estimate=pl.CostEstimate(flops=flops, transcendentals=2 * Cout,
                                      bytes_accessed=bytes_accessed),
    )(x_i2c, w1p, w2p,
      g1.reshape(1, Cout).astype(jnp.float32),
      b1.reshape(1, Cout).astype(jnp.float32),
      g2.reshape(1, Cout).astype(jnp.float32),
      b2.reshape(1, Cout).astype(jnp.float32))

    # (B*Lout, Cout) -> NCL (B, Cout, Lout); cheap XLA-side layout fixup.
    return jnp.transpose(out2d.reshape(B, Lout, Cout), (0, 2, 1))


def _reference(x, w1, w2, g1, b1, g2, b2, pool_size):
    """Pure-JAX reference of the PyTorch forward (training-mode BN)."""
    def conv1d(x, w, dilation):
        return jax.lax.conv_general_dilated(
            x, w, window_strides=(1,), padding=[(dilation, dilation)],
            rhs_dilation=(dilation,), dimension_numbers=("NCH", "OIH", "NCH"))

    def bn_relu(y, g, b):
        mean = jnp.mean(y, axis=(0, 2), keepdims=True)
        var = jnp.mean((y - mean) ** 2, axis=(0, 2), keepdims=True)
        yn = (y - mean) * jax.lax.rsqrt(var + 1e-5)
        return jnp.maximum(yn * g.reshape(1, -1, 1) + b.reshape(1, -1, 1), 0.0)

    h = bn_relu(conv1d(x, w1, 1), g1, b1)
    h2 = bn_relu(conv1d(h, w2, 2), g2, b2)
    B, C, L = h2.shape
    Lout = L // pool_size
    return jnp.max(h2[:, :, :Lout * pool_size].reshape(B, C, Lout, pool_size),
                   axis=-1)


if __name__ == "__main__":
    B, Cin, Cout, L, pool_size = 2, 4, 8, 16, 4

    key = jax.random.PRNGKey(0)
    k1, k2, kx = jax.random.split(key, 3)

    def xavier_uniform(k, out_c, in_c, ksize):
        fan_in, fan_out = in_c * ksize, out_c * ksize
        a = (6.0 / (fan_in + fan_out)) ** 0.5
        return jax.random.uniform(k, (out_c, in_c, ksize), jnp.float32, -a, a)

    # deterministic parameter init (matches module __init__ shapes / init rules)
    w1 = xavier_uniform(k1, Cout, Cin, 3)      # conv1.weight (Cout, Cin, 3)
    w2 = xavier_uniform(k2, Cout, Cout, 3)     # conv2.weight (Cout, Cout, 3)
    g1 = jnp.ones((Cout,), jnp.float32)        # bn1.weight = 1
    b1 = jnp.zeros((Cout,), jnp.float32)       # bn1.bias   = 0
    g2 = jnp.ones((Cout,), jnp.float32)        # bn2.weight = 1
    b2 = jnp.zeros((Cout,), jnp.float32)       # bn2.bias   = 0

    x = jax.random.normal(kx, (B, Cin, L), jnp.float32)

    # Note: the module's default pool_size=(1,1) is a PANN quirk; in practice an
    # int pool_size is passed to F.max_pool1d, which we mirror here.
    out = conv_pre_wav_block(x, w1, w2, g1, b1, g2, b2, pool_size=pool_size)
    out = jax.block_until_ready(out)
    assert out.shape == (B, Cout, L // pool_size), out.shape

    ref = jax.block_until_ready(_reference(x, w1, w2, g1, b1, g2, b2, pool_size))
    assert jnp.allclose(out, ref, atol=1e-3, rtol=1e-3), float(
        jnp.max(jnp.abs(out - ref)))

    # Opt-in bf16-MXU-operand fast path (numerics differ slightly from f32 ref).
    out_bf16 = conv_pre_wav_block(x, w1, w2, g1, b1, g2, b2,
                                  pool_size=pool_size, use_bf16_matmul=True)
    out_bf16 = jax.block_until_ready(out_bf16)
    assert out_bf16.shape == (B, Cout, L // pool_size), out_bf16.shape
    assert jnp.allclose(out_bf16, ref, atol=5e-2, rtol=5e-2)

    print("KERNEL_OK")
</pallas_src>

<mosaic_0001>
module attributes {stable_mosaic.version = 11 : i64} {
  func.func @_conv_pre_wav_kernel(%arg0: memref<32x12xf32, #tpu.memory_space<vmem>>, %arg1: memref<12x8xf32, #tpu.memory_space<vmem>>, %arg2: memref<8x24xf32, #tpu.memory_space<vmem>>, %arg3: memref<1x8xf32, #tpu.memory_space<vmem>>, %arg4: memref<1x8xf32, #tpu.memory_space<vmem>>, %arg5: memref<1x8xf32, #tpu.memory_space<vmem>>, %arg6: memref<1x8xf32, #tpu.memory_space<vmem>>, %arg7: memref<8x8xf32, #tpu.memory_space<vmem>>, %arg8: memref<32x8xf32, #tpu.memory_space<vmem>>) attributes {dimension_semantics = [], scalar_prefetch = 0 : i64, scratch_operands = 1 : i64, tpu.core_type = #tpu.core_type<tc>} {
    %0 = tpu.iota {dimensions = array<i32: 0>} : vector<32x1xi32>
    %c15_i32 = arith.constant 15 : i32
    %1 = vector.broadcast %c15_i32 : i32 to vector<32x1xi32>
    %2 = arith.andi %0, %1 : vector<32x1xi32>
    %c0 = arith.constant 0 : index
    %c0_0 = arith.constant 0 : index
    %3 = vector.load %arg0[%c0, %c0_0] : memref<32x12xf32, #tpu.memory_space<vmem>>, vector<32x12xf32>
    %c0_1 = arith.constant 0 : index
    %c0_2 = arith.constant 0 : index
    %4 = vector.load %arg1[%c0_1, %c0_2] : memref<12x8xf32, #tpu.memory_space<vmem>>, vector<12x8xf32>
    %cst = arith.constant dense<0.000000e+00> : vector<32x8xf32>
    %5 = tpu.matmul %3, %4, %cst {dimension_numbers = #tpu.dot_dimension_numbers<[1], [0], [0], [1], [0, 0, 1, 1], [], []>} : vector<32x12xf32>, vector<12x8xf32>, vector<32x8xf32> -> vector<32x8xf32>
    %cst_3 = arith.constant dense<0.000000e+00> : vector<8xf32>
    %6 = vector.multi_reduction <add>, %5, %cst_3 [0] : vector<32x8xf32> to vector<8xf32>
    %7 = vector.shape_cast %6 : vector<8xf32> to vector<1x8xf32>
    %8 = arith.mulf %5, %5 : vector<32x8xf32>
    %cst_4 = arith.constant dense<0.000000e+00> : vector<8xf32>
    %9 = vector.multi_reduction <add>, %8, %cst_4 [0] : vector<32x8xf32> to vector<8xf32>
    %10 = vector.shape_cast %9 : vector<8xf32> to vector<1x8xf32>
    %cst_5 = arith.constant 3.200000e+01 : f32
    %11 = vector.broadcast %cst_5 : f32 to vector<1x8xf32>
    %12 = arith.divf %7, %11 : vector<1x8xf32>
    %cst_6 = arith.constant 3.200000e+01 : f32
    %13 = vector.broadcast %cst_6 : f32 to vector<1x8xf32>
    %14 = arith.divf %10, %13 : vector<1x8xf32>
    %15 = arith.mulf %12, %12 : vector<1x8xf32>
    %16 = arith.subf %14, %15 : vector<1x8xf32>
    %c0_7 = arith.constant 0 : index
    %c0_8 = arith.constant 0 : index
    %17 = vector.load %arg3[%c0_7, %c0_8] : memref<1x8xf32, #tpu.memory_space<vmem>>, vector<1x8xf32>
    %cst_9 = arith.constant 9.99999974E-6 : f32
    %18 = vector.broadcast %cst_9 : f32 to vector<1x8xf32>
    %19 = arith.addf %16, %18 : vector<1x8xf32>
    %20 = math.rsqrt %19 : vector<1x8xf32>
    %21 = arith.mulf %17, %20 : vector<1x8xf32>
    %c0_10 = arith.constant 0 : index
    %c0_11 = arith.constant 0 : index
    %22 = vector.load %arg4[%c0_10, %c0_11] : memref<1x8xf32, #tpu.memory_space<vmem>>, vector<1x8xf32>
    %23 = arith.mulf %12, %21 : vector<1x8xf32>
    %24 = arith.subf %22, %23 : vector<1x8xf32>
    %25 = vector.broadcast %21 : vector<1x8xf32> to vector<32x8xf32>
    %26 = arith.mulf %5, %25 : vector<32x8xf32>
    %27 = vector.broadcast %24 : vector<1x8xf32> to vector<32x8xf32>
    %28 = arith.addf %26, %27 : vector<32x8xf32>
    %cst_12 = arith.constant 0.000000e+00 : f32
    %29 = vector.broadcast %cst_12 : f32 to vector<32x8xf32>
    %30 = arith.maximumf %28, %29 : vector<32x8xf32>
    %c0_13 = arith.constant 0 : index
    %c0_14 = arith.constant 0 : index
    %31 = vector.load %arg2[%c0_13, %c0_14] : memref<8x24xf32, #tpu.memory_space<vmem>>, vector<8x24xf32>
    %cst_15 = arith.constant dense<0.000000e+00> : vector<32x24xf32>
    %32 = tpu.matmul %30, %31, %cst_15 {dimension_numbers = #tpu.dot_dimension_numbers<[1], [0], [0], [1], [0, 0, 1, 1], [], []>} : vector<32x8xf32>, vector<8x24xf32>, vector<32x24xf32> -> vector<32x24xf32>
    %33 = vector.extract_strided_slice %32 {offsets = [0, 0], sizes = [32, 8], strides = [1, 1]} : vector<32x24xf32> to vector<32x8xf32>
    %34 = vector.extract_strided_slice %32 {offsets = [0, 8], sizes = [32, 8], strides = [1, 1]} : vector<32x24xf32> to vector<32x8xf32>
    %35 = vector.extract_strided_slice %32 {offsets = [0, 16], sizes = [32, 8], strides = [1, 1]} : vector<32x24xf32> to vector<32x8xf32>
    %c2_i32 = arith.constant 2 : i32
    %36 = vector.broadcast %c2_i32 : i32 to vector<32x1xi32>
    %37 = arith.cmpi sge, %2, %36 : vector<32x1xi32>
    %c2_i32_16 = arith.constant 2 : i32
    %38 = tpu.dynamic_rotate %33 by %c2_i32_16 dim 0 : vector<32x8xf32>, i32 -> vector<32x8xf32>
    %cst_17 = arith.constant 0.000000e+00 : f32
    %39 = vector.shape_cast %37 : vector<32x1xi1> to vector<32x1xi1>
    %40 = vector.broadcast %39 : vector<32x1xi1> to vector<32x8xi1>
    %41 = vector.broadcast %cst_17 : f32 to vector<32x8xf32>
    %42 = arith.select %40, %38, %41 : vector<32x8xi1>, vector<32x8xf32>
    %43 = arith.addf %42, %34 : vector<32x8xf32>
    %c13_i32 = arith.constant 13 : i32
    %44 = vector.broadcast %c13_i32 : i32 to vector<32x1xi32>
    %45 = arith.cmpi sle, %2, %44 : vector<32x1xi32>
    %c30_i32 = arith.constant 30 : i32
    %46 = tpu.dynamic_rotate %35 by %c30_i32 dim 0 : vector<32x8xf32>, i32 -> vector<32x8xf32>
    %cst_18 = arith.constant 0.000000e+00 : f32
    %47 = vector.shape_cast %45 : vector<32x1xi1> to vector<32x1xi1>
    %48 = vector.broadcast %47 : vector<32x1xi1> to vector<32x8xi1>
    %49 = vector.broadcast %cst_18 : f32 to vector<32x8xf32>
    %50 = arith.select %48, %46, %49 : vector<32x8xi1>, vector<32x8xf32>
    %51 = arith.addf %43, %50 : vector<32x8xf32>
    %cst_19 = arith.constant dense<0.000000e+00> : vector<8xf32>
    %52 = vector.multi_reduction <add>, %51, %cst_19 [0] : vector<32x8xf32> to vector<8xf32>
    %53 = vector.shape_cast %52 : vector<8xf32> to vector<1x8xf32>
    %54 = arith.mulf %51, %51 : vector<32x8xf32>
    %cst_20 = arith.constant dense<0.000000e+00> : vector<8xf32>
    %55 = vector.multi_reduction <add>, %54, %cst_20 [0] : vector<32x8xf32> to vector<8xf32>
    %56 = vector.shape_cast %55 : vector<8xf32> to vector<1x8xf32>
    %cst_21 = arith.constant 3.200000e+01 : f32
    %57 = vector.broadcast %cst_21 : f32 to vector<1x8xf32>
    %58 = arith.divf %53, %57 : vector<1x8xf32>
    %cst_22 = arith.constant 3.200000e+01 : f32
    %59 = vector.broadcast %cst_22 : f32 to vector<1x8xf32>
    %60 = arith.divf %56, %59 : vector<1x8xf32>
    %61 = arith.mulf %58, %58 : vector<1x8xf32>
    %62 = arith.subf %60, %61 : vector<1x8xf32>
    %c0_23 = arith.constant 0 : index
    %c0_24 = arith.constant 0 : index
    %63 = vector.load %arg5[%c0_23, %c0_24] : memref<1x8xf32, #tpu.memory_space<vmem>>, vector<1x8xf32>
    %cst_25 = arith.constant 9.99999974E-6 : f32
    %64 = vector.broadcast %cst_25 : f32 to vector<1x8xf32>
    %65 = arith.addf %62, %64 : vector<1x8xf32>
    %66 = math.rsqrt %65 : vector<1x8xf32>
    %67 = arith.mulf %63, %66 : vector<1x8xf32>
    %c0_26 = arith.constant 0 : index
    %c0_27 = arith.constant 0 : index
    %68 = vector.load %arg6[%c0_26, %c0_27] : memref<1x8xf32, #tpu.memory_space<vmem>>, vector<1x8xf32>
    %69 = arith.mulf %58, %67 : vector<1x8xf32>
    %70 = arith.subf %68, %69 : vector<1x8xf32>
    %71 = vector.broadcast %67 : vector<1x8xf32> to vector<32x8xf32>
    %72 = arith.mulf %51, %71 : vector<32x8xf32>
    %73 = vector.broadcast %70 : vector<1x8xf32> to vector<32x8xf32>
    %74 = arith.addf %72, %73 : vector<32x8xf32>
    %cst_28 = arith.constant 0.000000e+00 : f32
    %75 = vector.broadcast %cst_28 : f32 to vector<32x8xf32>
    %76 = arith.maximumf %74, %75 : vector<32x8xf32>
    %c31_i32 = arith.constant 31 : i32
    %77 = tpu.dynamic_rotate %76 by %c31_i32 dim 0 : vector<32x8xf32>, i32 -> vector<32x8xf32>
    %78 = arith.maximumf %76, %77 : vector<32x8xf32>
    %c30_i32_29 = arith.constant 30 : i32
    %79 = tpu.dynamic_rotate %76 by %c30_i32_29 dim 0 : vector<32x8xf32>, i32 -> vector<32x8xf32>
    %80 = arith.maximumf %78, %79 : vector<32x8xf32>
    %c29_i32 = arith.constant 29 : i32
    %81 = tpu.dynamic_rotate %76 by %c29_i32 dim 0 : vector<32x8xf32>, i32 -> vector<32x8xf32>
    %82 = arith.maximumf %80, %81 : vector<32x8xf32>
    %c0_30 = arith.constant 0 : index
    %c0_31 = arith.constant 0 : index
    %83 = vector.load %arg8[%c0_30, %c0_31] : memref<32x8xf32, #tpu.memory_space<vmem>>, vector<32x8xf32>
    tpu.vector_store %arg8[%c0_30, %c0_31], %82 {strides = array<i32>} : memref<32x8xf32, #tpu.memory_space<vmem>>, vector<32x8xf32>,
    %c0_32 = arith.constant 0 : index
    %c0_33 = arith.constant 0 : index
    %84 = tpu.strided_load %arg8[%c0_32, %c0_33] {strides = array<i32: 4, 1>} : memref<32x8xf32, #tpu.memory_space<vmem>>, vector<8x8xf32>
    %c0_34 = arith.constant 0 : index
    %c0_35 = arith.constant 0 : index
    %85 = vector.load %arg7[%c0_34, %c0_35] : memref<8x8xf32, #tpu.memory_space<vmem>>, vector<8x8xf32>
    tpu.vector_store %arg7[%c0_34, %c0_35], %84 {strides = array<i32>} : memref<8x8xf32, #tpu.memory_space<vmem>>, vector<8x8xf32>,
    return
  }
}

</mosaic_0001>

<bundles_post_ra>
// kernel: tpu_custom_call.1
= control target key start
LH: loop header
LB: loop body
LE: loop exit
PB: predicated region body
PF: predicated region fallthrough
CT: control target
= control target key end

     0   :  { %vm55_vm0 = vcmask 1043456   ;;  %vm42_vm1 = vcmask 97280   ;;  %s657_s0 = inlined_call_operand.vmem [shape: f32[32,12], index: 0, kind: input, shape index: {}]   ;;  %s658_s1 = inlined_call_operand.vmem [shape: f32[12,8], index: 1, kind: input, shape index: {}]   ;;  %s659_s2 = inlined_call_operand.vmem [shape: f32[8,24], index: 2, kind: input, shape index: {}]   ;;  %s660_s3 = inlined_call_operand.vmem [shape: f32[1,8], index: 3, kind: input, shape index: {}]   ;;  %s661_s4 = inlined_call_operand.vmem [shape: f32[1,8], index: 4, kind: input, shape index: {}]   ;;  %s662_s5 = inlined_call_operand.vmem [shape: f32[1,8], index: 5, kind: input, shape index: {}]   ;;  %s663_s6 = inlined_call_operand.vmem [shape: f32[1,8], index: 6, kind: input, shape index: {}]   ;;  %s664_s7 = inlined_call_operand.hbm [shape: f32[8,8], index: 7, kind: output, shape index: {}]  }
   0x1   :  { %v41_v0 = vld [vmem:[%s658_s1 + $0x8] sm:$0xf]  ;;  %v40_v1 = vld [vmem:[%s658_s1] sm:$0xff]  ;;  %v38_v3 = vld [vmem:[%s657_s0 + $0x10] sm:$0xff] }
   0x2   :  { %420 = vmatpush.msk.msra.mxu0 %vm55_vm0, %v41_v0  ;;  %429 = vmatpush.msk.msra.mxu2 %vm55_vm0, %v41_v0  ;;  %v36_v2 = vld [vmem:[%s657_s0] sm:$0xff] }
   0x3   :  { %12 = vsyncpa [#allocation4], 0  ;;  %v37_v4 = vld [vmem:[%s657_s0 + $0x8] sm:$0xff]  ;;  %v39_v5 = vld [vmem:[%s657_s0 + $0x18] sm:$0xff]  ;;  %v468_v7 = vmov 32.0   ;;  %vm88_vm2 = vcmask 64512  }
   0x4   :  { %74 = vmatpush.msra.mxu0 %v40_v1  ;;  %430 = vmatpush.msra.mxu2 %v40_v1  ;;  %436 = vrcp.f32 %v468_v7  ;;  %v164_v50 = vld [vmem:[%s659_s2] sm:$0xff]  ;;  %s411_s22 = sshll.u32 %s664_s7, 4  ;;  %s412_s22 = int_to_ptr.hbm [resolvable:$true] %s411_s22 }
   0x5   :  { %421 = vmatmul.msk.f32.vlgmr.msra.gmra.mxu0 %vm42_vm1, %v36_v2  ;;  %423 = vmatmul.msk.f32.vlgmr.msra.gmra.mxu2 %vm42_vm1, %v38_v3  ;;  %v130_v58 = vld [vmem:[%s660_s3] sm:$0x1]  ;;  %s469_s3 = smov 112  }
   0x6   :  { %192 = vmatpush.msra.mxu1 %v164_v50  ;;  %431 = vmatpush.msra.mxu3 %v164_v50  ;;  %v143_v62 = vld [vmem:[%s661_s4] sm:$0x1]  ;;  %s470_s4 = smov 120  }
   0xa   :  { %v437_v10 = vpop.eup %436 }
   0xb   :  { %v120_v19 = vmul.f32 32.0, %v437_v10  ;;  %vm124_vm3 = vweird.f32 %v437_v10 }
   0xd   :  { %422 = vmatmul.msk.f32.gmra.mxu0 %vm42_vm1, %v37_v4  ;;  %424 = vmatmul.msk.f32.gmra.mxu2 %vm42_vm1, %v39_v5  ;;  %v121_v27 = vsub.f32 1.0, %v120_v19 }
   0xf   :  { %v122_v33 = vmul.f32 %v437_v10, %v121_v27 }
  0x11   :  { %v123_v38 = vadd.f32 %v437_v10, %v122_v33 }
  0x13   :  { %v558_v43 = vsel %vm124_vm3, %v437_v10, %v123_v38 }
  0x82   :  { %v530_v6 = vpop.f32.mrf.mxu0 }
  0x83   :  { %v102_v9 = vmul.f32 %v530_v6, %v530_v6  ;;  %v89_v12 = vsel %vm88_vm2, %v530_v6, 0.0 }
  0x85   :  { %v106_v16 = vsel %vm88_vm2, %v102_v9, 0.0 }
  0x88   :  { %v532_v8 = vpop.f32.mrf.mxu2 }
  0x89   :  { %v104_v17 = vmul.f32 %v532_v8, %v532_v8  ;;  %v92_v21 = vsel %vm88_vm2, %v532_v8, 0.0 }
  0x8a   :  { %v536_v11 = vpop.f32.mrf.mxu0 }
  0x8b   :  { %v90_v13 = vsel %vm88_vm2, %v536_v11, 0.0  ;;  %v103_v14 = vmul.f32 %v536_v11, %v536_v11  ;;  %v109_v24 = vsel %vm88_vm2, %v104_v17, 0.0 }
  0x8c   :  { %v91_v15 = vadd.f32 %v90_v13, %v89_v12 }
  0x8d   :  { %v107_v18 = vsel %vm88_vm2, %v103_v14, 0.0 }
  0x8e   :  { %v108_v20 = vadd.f32 %v107_v18, %v106_v16  ;;  %v93_v23 = vadd.f32 %v92_v21, %v91_v15 }
  0x90   :  { %v550_v22 = vpop.f32.mrf.mxu2  ;;  %v110_v29 = vadd.f32 %v109_v24, %v108_v20 }
  0x91   :  { %v94_v25 = vsel %vm88_vm2, %v550_v22, 0.0  ;;  %v105_v26 = vmul.f32 %v550_v22, %v550_v22 }
  0x92   :  { %v95_v28 = vadd.f32 %v94_v25, %v93_v23 }
  0x93   :  { %v111_v30 = vsel %vm88_vm2, %v105_v26, 0.0 }
  0x94   :  { %v96_v31 = vrot.slane %v95_v28, 4  ;;  %v112_v32 = vadd.f32 %v111_v30, %v110_v29 }
  0x96   :  { %v97_v34 = vadd.f32 %v96_v31, %v95_v28  ;;  %v113_v35 = vrot.slane %v112_v32, 4 }
  0x98   :  { %v98_v36 = vrot.slane %v97_v34, 2  ;;  %v114_v37 = vadd.f32 %v113_v35, %v112_v32 }
  0x9a   :  { %v99_v39 = vadd.f32 %v98_v36, %v97_v34  ;;  %v115_v40 = vrot.slane %v114_v37, 2 }
  0x9c   :  { %v100_v41 = vrot.slane %v99_v39, 1  ;;  %v116_v42 = vadd.f32 %v115_v40, %v114_v37 }
  0x9e   :  { %v101_v44 = vadd.f32 %v100_v41, %v99_v39  ;;  %v117_v45 = vrot.slane %v116_v42, 1 }
  0xa0   :  { %v118_v46 = vadd.f32 %v117_v45, %v116_v42  ;;  %v126_v47 = vmul.f32 %v558_v43, %v101_v44 }
  0xa2   :  { %v127_v48 = vmul.f32 %v558_v43, %v118_v46  ;;  %v128_v49 = vmul.f32 %v126_v47, %v126_v47 }
  0xa4   :  { %v129_v51 = vsub.f32 %v127_v48, %v128_v49 }
  0xa6   :  { %v131_v52 = vadd.f32 1e-05, %v129_v51 }
  0xa8   :  { %438 = vrsqrt.f32 %v131_v52  ;;  %vm138_vm5 = vweird.f32 %v131_v52 }
  0xae   :  { %v439_v53 = vpop.eup %438 }
  0xaf   :  { %v133_v54 = vmul.f32 %v439_v53, %v131_v52  ;;  %vm139_vm4 = vweird.f32 %v439_v53 }
  0xb0   :  { %vm140_vm6 = vmor %vm138_vm5, %vm139_vm4 }
  0xb1   :  { %v134_v55 = vmul.f32 %v439_v53, %v133_v54 }
  0xb3   :  { %v135_v56 = vmul.f32 0.5, %v134_v55 }
  0xb5   :  { %v136_v57 = vsub.f32 1.5, %v135_v56 }
  0xb7   :  { %v137_v59 = vmul.f32 %v439_v53, %v136_v57 }
  0xb9   :  { %v141_v60 = vsel %vm140_vm6, %v439_v53, %v137_v59 }
  0xba   :  { %v142_v61 = vmul.f32 %v141_v60, %v130_v58 }
  0xbc   :  { %v144_v63 = vmul.f32 %v142_v61, %v126_v47  ;;  %v147_v0 = vperm.slane %v142_v61, 0 }
  0xbe   :  { %v145_v1 = vsub.f32 %v143_v62, %v144_v63  ;;  %v149_v3 = vmul.f32 %v147_v0, %v530_v6  ;;  %v150_v4 = vmul.f32 %v147_v0, %v536_v11  ;;  %v151_v12 = vmul.f32 %v147_v0, %v532_v8 }
  0xbf   :  { %v152_v15 = vmul.f32 %v147_v0, %v550_v22  ;;  %v27_v11 = vlaneseq }
  0xc0   :  { %v154_v2 = vperm.slane %v145_v1, 0 }
  0xc1   :  { %v579_v18 = vshrl.u32 %v27_v11, 7 }
  0xc2   :  { %v156_v5 = vadd.f32 %v154_v2, %v149_v3  ;;  %v157_v7 = vadd.f32 %v154_v2, %v150_v4  ;;  %v158_v13 = vadd.f32 %v154_v2, %v151_v12  ;;  %v159_v16 = vadd.f32 %v154_v2, %v152_v15 }
  0xc3   :  { %vm214_vm7 = vcmp.lt.s32.totalorder %v579_v18, 2  ;;  %v32_v30 = vand.u32 15, %v579_v18  ;;  %v29_v32 = vadd.s32 8, %v579_v18  ;;  %vm271_vm9 = vcmp.lt.s32.totalorder %v579_v18, 6 }
  0xc4   :  { %v160_v9 = vmax.f32 %v156_v5, 0.0  ;;  %v161_v10 = vmax.f32 %v157_v7, 0.0  ;;  %v162_v14 = vmax.f32 %v158_v13, 0.0  ;;  %v163_v6 = vmax.f32 %v159_v16, 0.0 }
  0xc5   :  { %vm206_vm8 = vcmp.ge.s32.totalorder %v32_v30, 2  ;;  %v33_v39 = vand.u32 15, %v29_v32  ;;  %v30_v40 = vadd.s32 16, %v579_v18  ;;  %v31_v44 = vadd.s32 24, %v579_v18 }
  0xc6   :  { %425 = vmatmul.msk.f32.vlgmr.msra.gmra.mxu1 %vm88_vm2, %v160_v9  ;;  %426 = vmatmul.msk.f32.vlgmr.msra.gmra.mxu3 %vm88_vm2, %v161_v10  ;;  %vm364_vm0 = vcmp.lt.s32.totalorder %v579_v18, 7  ;;  %vm389_vm1 = vcmp.lt.s32.totalorder %v579_v18, 5 }
  0xc7   :  { %vm252_vm10 = vcmp.le.s32.totalorder %v33_v39, 13  ;;  %v34_v47 = vand.u32 15, %v30_v40  ;;  %v35_v52 = vand.u32 15, %v31_v44 }
  0xc9   :  { %vm208_vm11 = vcmp.ge.s32.totalorder %v34_v47, 2  ;;  %vm254_vm12 = vcmp.le.s32.totalorder %v35_v52, 13 }
  0xce   :  { %427 = vmatmul.msk.f32.gmra.mxu3 %vm88_vm2, %v162_v14 }
  0xd6   :  { %428 = vmatmul.msk.f32.gmra.mxu3 %vm88_vm2, %v163_v6 }
 0x143   :  { %v194_v17 = vpop.f32.mrf.mxu1 }
 0x144   :  { %255 = vrot.lane.b32.xlu1 %v194_v17, %s469_s3  ;;  %v210_v8 = vrot.slane %v194_v17, 6 }
 0x149   :  { %v197_v19 = vpop.f32.mrf.mxu3 }
 0x14a   :  { %v211_v20 = vrot.slane %v197_v19, 6  ;;  %237 = vrot.lane.b32.xlu2 %v197_v19, %s470_s4  ;;  %257 = vrot.lane.b32.xlu0 %v197_v19, %s469_s3 }
 0x14c   :  { %235 = vrot.lane.b32.xlu1 %v194_v17, %s470_s4  ;;  %v217_v21 = vsel %vm214_vm7, %v210_v8, %v211_v20 }
 0x151   :  { %v200_v22 = vpop.f32.mrf.mxu3 }
 0x152   :  { %v212_v23 = vrot.slane %v200_v22, 6  ;;  %259 = vrot.lane.b32.xlu0 %v200_v22, %s469_s3 }
 0x154   :  { %v216_v24 = vsel %vm214_vm7, %v211_v20, %v212_v23 }
 0x155   :  { %v229_v60 = vsel %vm208_vm11, %v216_v24, 0.0 }
 0x159   :  { %v203_v25 = vpop.f32.mrf.mxu3 }
 0x15a   :  { %v213_v26 = vrot.slane %v203_v25, 6  ;;  %239 = vrot.lane.b32.xlu0 %v200_v22, %s470_s4  ;;  %261 = vrot.lane.b32.xlu2 %v203_v25, %s469_s3 }
 0x15b   :  { %241 = vrot.lane.b32.xlu1 %v203_v25, %s470_s4 }
 0x15c   :  { %v218_v27 = vsel %vm214_vm7, %v213_v26, %v210_v8  ;;  %v215_v28 = vsel %vm214_vm7, %v212_v23, %v213_v26 }
 0x15d   :  { %v227_v37 = vsel %vm206_vm8, %v218_v27, 0.0 }
 0x1a4   :  { %v238_v35 = vpop.permute.xlu2 %237 }
 0x1a5   :  { %v248_v48 = vadd.f32 %v238_v35, %v217_v21 }
 0x1b4   :  { %v262_v49 = vpop.permute.xlu2 %261 }
 0x1b5   :  { %v270_v55 = vrot.slane %v262_v49, 2 }
 0x1b6   :  { %v256_v29 = vpop.permute.xlu1 %255 }
 0x1b7   :  { %v267_v36 = vrot.slane %v256_v29, 2 }
 0x1b9   :  { %v275_v62 = vsel %vm271_vm9, %v270_v55, %v267_v36 }
 0x1ba   :  { %v287_v9 = vsel %vm254_vm12, %v275_v62, 0.0 }
 0x1bc   :  { %v258_v31 = vpop.permute.xlu0 %257 }
 0x1bd   :  { %v268_v33 = vrot.slane %v258_v31, 2 }
 0x1be   :  { %v236_v34 = vpop.permute.xlu1 %235 }
 0x1bf   :  { %v247_v38 = vadd.f32 %v236_v34, %v227_v37  ;;  %v274_v41 = vsel %vm271_vm9, %v267_v36, %v268_v33 }
 0x1c1   :  { %v597_v45 = vadd.f32 %v274_v41, %v247_v38 }
 0x1c3   :  { %v305_v53 = vmul.f32 %v597_v45, %v597_v45  ;;  %v292_v56 = vsel %vm88_vm2, %v597_v45, 0.0 }
 0x1c4   :  { %v260_v42 = vpop.permute.xlu0 %259 }
 0x1c5   :  { %v269_v46 = vrot.slane %v260_v42, 2  ;;  %v309_v63 = vsel %vm88_vm2, %v305_v53, 0.0  ;;  %v326_v42 = vld [vmem:[%s662_s5] sm:$0x1]  ;;  %s471_s5 = smov [#allocation3]  }
 0x1c7   :  { %v273_v50 = vsel %vm271_vm9, %v268_v33, %v269_v46  ;;  %v272_v3 = vsel %vm271_vm9, %v269_v46, %v270_v55 }
 0x1c8   :  { %v285_v51 = vsel %vm252_vm10, %v273_v50, 0.0 }
 0x1c9   :  { %v603_v54 = vadd.f32 %v285_v51, %v248_v48 }
 0x1cb   :  { %v306_v57 = vmul.f32 %v603_v54, %v603_v54  ;;  %v293_v58 = vsel %vm88_vm2, %v603_v54, 0.0 }
 0x1cc   :  { %v240_v59 = vpop.permute.xlu0 %239  ;;  %v294_v61 = vadd.f32 %v293_v58, %v292_v56 }
 0x1cd   :  { %v249_v0 = vadd.f32 %v240_v59, %v229_v60  ;;  %v310_v1 = vsel %vm88_vm2, %v306_v57, 0.0  ;;  %v242_v2 = vpop.permute.xlu1 %241 }
 0x1ce   :  { %v311_v4 = vadd.f32 %v310_v1, %v309_v63  ;;  %v250_v5 = vadd.f32 %v242_v2, %v215_v28 }
 0x1cf   :  { %v290_v7 = vadd.f32 %v272_v3, %v249_v0 }
 0x1d0   :  { %v291_v10 = vadd.f32 %v287_v9, %v250_v5 }
 0x1d1   :  { %v295_v12 = vsel %vm88_vm2, %v290_v7, 0.0  ;;  %v307_v13 = vmul.f32 %v290_v7, %v290_v7 }
 0x1d2   :  { %v296_v14 = vadd.f32 %v295_v12, %v294_v61  ;;  %v308_v15 = vmul.f32 %v291_v10, %v291_v10  ;;  %v297_v6 = vsel %vm88_vm2, %v291_v10, 0.0 }
 0x1d3   :  { %v312_v16 = vsel %vm88_vm2, %v307_v13, 0.0 }
 0x1d4   :  { %v313_v11 = vadd.f32 %v312_v16, %v311_v4  ;;  %v298_v17 = vadd.f32 %v297_v6, %v296_v14  ;;  %v314_v19 = vsel %vm88_vm2, %v308_v15, 0.0 }
 0x1d6   :  { %v299_v8 = vrot.slane %v298_v17, 4  ;;  %v315_v20 = vadd.f32 %v314_v19, %v313_v11 }
 0x1d8   :  { %v300_v21 = vadd.f32 %v299_v8, %v298_v17  ;;  %v316_v22 = vrot.slane %v315_v20, 4 }
 0x1da   :  { %v301_v23 = vrot.slane %v300_v21, 2  ;;  %v317_v24 = vadd.f32 %v316_v22, %v315_v20 }
 0x1dc   :  { %v302_v25 = vadd.f32 %v301_v23, %v300_v21  ;;  %v318_v26 = vrot.slane %v317_v24, 2 }
 0x1de   :  { %v303_v27 = vrot.slane %v302_v25, 1  ;;  %v319_v28 = vadd.f32 %v318_v26, %v317_v24 }
 0x1e0   :  { %v304_v29 = vadd.f32 %v303_v27, %v302_v25  ;;  %v320_v30 = vrot.slane %v319_v28, 1 }
 0x1e2   :  { %v321_v31 = vadd.f32 %v320_v30, %v319_v28  ;;  %v322_v32 = vmul.f32 %v304_v29, %v558_v43 }
 0x1e4   :  { %v323_v33 = vmul.f32 %v321_v31, %v558_v43  ;;  %v324_v34 = vmul.f32 %v322_v32, %v322_v32  ;;  %v339_v43 = vld [vmem:[%s663_s6] sm:$0x1]  ;;  %s409_s6 = sshll.u32 %s471_s5, 4  ;;  %s410_s6 = int_to_ptr.vmem [resolvable:$true] %s409_s6 }
 0x1e6   :  { %v325_v35 = vsub.f32 %v323_v33, %v324_v34 }
 0x1e8   :  { %v327_v36 = vadd.f32 1e-05, %v325_v35 }
 0x1ea   :  { %440 = vrsqrt.f32 %v327_v36  ;;  %vm334_vm14 = vweird.f32 %v327_v36 }
 0x1f0   :  { %v441_v37 = vpop.eup %440 }
 0x1f1   :  { %v329_v38 = vmul.f32 %v441_v37, %v327_v36  ;;  %vm335_vm13 = vweird.f32 %v441_v37 }
 0x1f2   :  { %vm336_vm15 = vmor %vm334_vm14, %vm335_vm13 }
 0x1f3   :  { %v330_v39 = vmul.f32 %v441_v37, %v329_v38 }
 0x1f5   :  { %v331_v40 = vmul.f32 0.5, %v330_v39 }
 0x1f7   :  { %v332_v41 = vsub.f32 1.5, %v331_v40 }
 0x1f9   :  { %v333_v44 = vmul.f32 %v441_v37, %v332_v41 }
 0x1fb   :  { %v337_v46 = vsel %vm336_vm15, %v441_v37, %v333_v44 }
 0x1fc   :  { %v338_v47 = vmul.f32 %v337_v46, %v326_v42 }
 0x1fe   :  { %v340_v48 = vmul.f32 %v338_v47, %v322_v32  ;;  %v343_v49 = vperm.slane %v338_v47, 0 }
 0x200   :  { %v341_v50 = vsub.f32 %v339_v43, %v340_v48  ;;  %v345_v51 = vmul.f32 %v343_v49, %v597_v45  ;;  %v346_v52 = vmul.f32 %v343_v49, %v603_v54  ;;  %v347_v53 = vmul.f32 %v343_v49, %v290_v7 }
 0x201   :  { %v348_v55 = vmul.f32 %v343_v49, %v291_v10 }
 0x202   :  { %v350_v56 = vperm.slane %v341_v50, 0 }
 0x204   :  { %v352_v57 = vadd.f32 %v350_v56, %v345_v51  ;;  %v353_v58 = vadd.f32 %v350_v56, %v346_v52  ;;  %v354_v59 = vadd.f32 %v350_v56, %v347_v53  ;;  %v355_v60 = vadd.f32 %v350_v56, %v348_v55 }
 0x206   :  { %v356_v61 = vmax.f32 %v352_v57, 0.0  ;;  %v357_v62 = vmax.f32 %v353_v58, 0.0  ;;  %v358_v63 = vmax.f32 %v354_v59, 0.0  ;;  %v359_v0 = vmax.f32 %v355_v60, 0.0 }
 0x208   :  { %v360_v1 = vrot.slane %v356_v61, 1  ;;  %v361_v2 = vrot.slane %v357_v62, 1  ;;  %v362_v45 = vrot.slane %v358_v63, 1  ;;  %v363_v3 = vrot.slane %v359_v0, 1 }
 0x209   :  { %v373_v54 = vrot.slane %v356_v61, 2  ;;  %v374_v4 = vrot.slane %v357_v62, 2  ;;  %v375_v5 = vrot.slane %v358_v63, 2  ;;  %v376_v7 = vrot.slane %v359_v0, 2 }
 0x20a   :  { %v365_v9 = vsel %vm364_vm0, %v362_v45, %v363_v3  ;;  %v366_v10 = vsel %vm364_vm0, %v361_v2, %v362_v45  ;;  %v367_v12 = vsel %vm364_vm0, %v360_v1, %v361_v2  ;;  %v368_v13 = vsel %vm364_vm0, %v363_v3, %v360_v1 }
 0x20b   :  { %v369_v14 = vmax.f32 %v356_v61, %v367_v12  ;;  %v370_v15 = vmax.f32 %v357_v62, %v366_v10  ;;  %v371_v16 = vmax.f32 %v358_v63, %v365_v9  ;;  %v372_v6 = vmax.f32 %v359_v0, %v368_v13 }
 0x20c   :  { %v377_v11 = vsel %vm271_vm9, %v375_v5, %v376_v7  ;;  %v378_v17 = vsel %vm271_vm9, %v374_v4, %v375_v5  ;;  %v379_v19 = vsel %vm271_vm9, %v373_v54, %v374_v4  ;;  %v380_v8 = vsel %vm271_vm9, %v376_v7, %v373_v54 }
 0x20d   :  { %v381_v20 = vmax.f32 %v369_v14, %v379_v19  ;;  %v382_v21 = vmax.f32 %v370_v15, %v378_v17  ;;  %v383_v22 = vmax.f32 %v371_v16, %v377_v11  ;;  %v384_v23 = vmax.f32 %v372_v6, %v380_v8 }
 0x20e   :  { %v385_v24 = vrot.slane %v356_v61, 3  ;;  %v386_v25 = vrot.slane %v357_v62, 3  ;;  %v387_v26 = vrot.slane %v358_v63, 3  ;;  %v388_v27 = vrot.slane %v359_v0, 3 }
 0x210   :  { %v390_v28 = vsel %vm389_vm1, %v387_v26, %v388_v27  ;;  %v391_v29 = vsel %vm389_vm1, %v386_v25, %v387_v26  ;;  %v392_v30 = vsel %vm389_vm1, %v385_v24, %v386_v25  ;;  %v393_v31 = vsel %vm389_vm1, %v388_v27, %v385_v24 }
 0x211   :  { %v394_v32 = vmax.f32 %v381_v20, %v392_v30  ;;  %v395_v33 = vmax.f32 %v382_v21, %v391_v29  ;;  %v396_v34 = vmax.f32 %v383_v22, %v390_v28  ;;  %v397_v35 = vmax.f32 %v384_v23, %v393_v31 }
 0x213   :  { %398 = vst.msk [vmem:[#allocation2] sm:$0xff] %vm88_vm2, %v394_v32 }
 0x214   :  { %399 = vst.msk [vmem:[#allocation2 + $0x8] sm:$0xff] %vm88_vm2, %v395_v33 }
 0x215   :  { %400 = vst.msk [vmem:[#allocation2 + $0x10] sm:$0xff] %vm88_vm2, %v396_v34 }
 0x216   :  { %401 = vst.msk [vmem:[#allocation2 + $0x18] sm:$0xff] %vm88_vm2, %v397_v35 }
 0x21d   :  { %v402_v18 = vld [vmem:[#allocation2] ss:$4 sm:$0xff] }
 0x21e   :  { %403 = vst.msk [vmem:[#allocation3] sm:$0xff] %vm88_vm2, %v402_v18 }
 0x21f   :  { %414 = dma.vmem_to_hbm [thread:$0]  %s410_s6, 128, %s412_s22, [#allocation4]  }
 0x220   :  { %466 = dma.done.wait [#allocation4], 128  }
 0x221   :  { %467 = vsyncadd [#allocation4], 4294967168 }
 0x222   :  { %419 = vsyncpa [#allocation4], 1 }

</bundles_post_ra>
